<compile_context>
chip_gen: v7x
topology: tpu7x:2x2x1
jax: 0.10.0
libtpu: 0.0.40
codegen_flags: <defaults>
</compile_context>

<pallas_src>
import functools
import math

import jax
import jax.numpy as jnp
from jax import lax
from jax.experimental import pallas as pl
from jax.experimental.pallas import tpu as pltpu


def _quamap_kernel(pmt_ref, bias_ref, x_ref, o_ref, *, gamma):
    # pmt_ref  : (N, gamma*N)  pmt[m, s*N + n] = softmax_n(pos_score)[s, m, n]
    # bias_ref : (N, 1)        token_proj_n_bias over the output-token axis m (f32)
    # x_ref    : (TR, N, TC)   row tile of x in native channel layout
    # o_ref    : (TR, N, TC)
    S = gamma
    TR, N, TC = x_ref.shape

    pmt = pmt_ref[...]                                        # (N, S*N) compute dtype
    # Hoisted out of the row loop (JAX does not CSE broadcast_in_dim).
    bias = jnp.broadcast_to(bias_ref[...], (N, TC))           # (N, TC) f32

    # Channel-group masks from the GLOBAL channel index: c = v*S + s  =>  s = c % S.
    # Correct for any gamma / lane-tile combination; computed once per grid step.
    lane = lax.broadcasted_iota(jnp.int32, (N, TC), 1)
    c_global = lane + pl.program_id(1) * TC
    masks = [(c_global % S) == s for s in range(S)]
    zero = jnp.zeros((), dtype=x_ref.dtype)

    def one_row(t):
        xt = x_ref[t]                                          # (N, TC)
        # Fold the group selection into the contraction: K = S*N instead of N,
        # no redundant output rows, no epilogue selects.
        xp = jnp.concatenate(
            [jnp.where(masks[s], xt, zero) for s in range(S)], axis=0)   # (S*N, TC)
        y = jnp.dot(pmt, xp, preferred_element_type=jnp.float32)         # (N, TC) f32
        o_ref[t] = (y + bias).astype(o_ref.dtype)

    U = math.gcd(TR, 8)   # manual unroll factor (always divides TR)

    @pl.loop(0, TR, step=U)
    def _(t0):
        for u in range(U):        # static unroll -> LLO can overlap MXU/VPU/stores
            one_row(t0 + u)


def _pick_lane_tile(C, gamma, N, itemsize):
    """Largest multiple of 128 (preferring multiples of lcm(128, gamma)) dividing C,
    capped so the (gamma*N, TC) matmul operand stays <= ~64 KiB (~16 vregs)."""
    budget = 64 * 1024
    cap = max(128, (budget // max(1, gamma * N * itemsize)) // 128 * 128)
    for step in (math.lcm(128, gamma), 128):
        top = (cap // step) * step
        for cand in range(top, 0, -step):
            if C % cand == 0:
                return cand
    # C < 128 or not a multiple of 128: full-C block (masked, narrow stores).
    # TODO(synk): pack several BW rows into the lane axis if small-C shapes are hot.
    return C


def _pick_row_tile(BW, row_bytes, target_bytes=4 << 20):
    """Largest divisor of BW keeping one x block <= ~4 MiB."""
    best = 1
    for r in range(1, BW + 1):
        if BW % r == 0 and r * row_bytes <= target_bytes:
            best = r
    return best


@functools.partial(jax.jit, static_argnames=("win_size", "gamma"))
def quamap1d_forward(x, attention_centers, attention_spreads, token_proj_n_bias,
                     *, win_size, gamma):
    """x: (B, W, N, C) with N == win_size and C % gamma == 0.  Runs in x.dtype."""
    B, W, N, C = x.shape
    assert N == win_size
    S = gamma
    assert C % S == 0
    BW = B * W

    # --- glue: tiny (S, N, N) posmap, softmax over the contraction axis n --------
    idx = jnp.arange(N, dtype=jnp.float32)
    indx = idx[None, :] - idx[:, None]                              # (m, n)
    rel = jnp.stack([indx, indx * indx], axis=-1)                   # (N, N, 2)
    delta = attention_centers.astype(jnp.float32)                   # (S, 1)
    inv_cov = attention_spreads.astype(jnp.float32)                 # (S, 1)
    pos_proj = -0.5 * jnp.concatenate([-2.0 * delta * inv_cov, inv_cov], axis=-1)
    pos_score = jnp.einsum("mnd,sd->smn", rel, pos_proj)            # (S, N, N)
    posmap = jax.nn.softmax(pos_score, axis=-1)                     # softmax over n
    # pmt[m, s*N + n] = posmap[s, m, n]  -- the MXU LHS (stationary, VMEM-resident)
    pmt = posmap.transpose(1, 0, 2).reshape(N, S * N).astype(x.dtype)

    bias = token_proj_n_bias.reshape(N, 1).astype(jnp.float32)

    # --- free reshape only (no data movement); tile rows and lanes ---------------
    xf = x.reshape(BW, N, C)
    TC = _pick_lane_tile(C, S, N, x.dtype.itemsize)
    row_bytes = N * TC * x.dtype.itemsize
    TR = _pick_row_tile(BW, row_bytes)
    # v7x has 2 TensorCores: keep >= 2 parallel grid steps when possible.
    if (BW // TR) * (C // TC) < 2 and TR % 2 == 0:
        TR //= 2
    grid = (BW // TR, C // TC)

    block_bytes = TR * row_bytes
    # in + out, double-buffered, plus headroom; safe on every generation
    # (<= 48 MiB, under v7x's 64 MiB physical VMEM).
    vmem_limit = min(48 << 20, max(32 << 20, 4 * block_bytes + (4 << 20)))

    out = pl.pallas_call(
        functools.partial(_quamap_kernel, gamma=S),
        out_shape=jax.ShapeDtypeStruct((BW, N, C), x.dtype),
        grid=grid,
        in_specs=[
            pl.BlockSpec((N, S * N), lambda i, j: (0, 0)),       # pmt:  VMEM-resident
            pl.BlockSpec((N, 1), lambda i, j: (0, 0)),           # bias: VMEM-resident
            pl.BlockSpec((TR, N, TC), lambda i, j: (i, 0, j)),   # x row/lane tile
        ],
        out_specs=pl.BlockSpec((TR, N, TC), lambda i, j: (i, 0, j)),
        compiler_params=pltpu.CompilerParams(
            dimension_semantics=("parallel", "parallel"),
            vmem_limit_bytes=vmem_limit),
    )(pmt, bias, xf)

    return out.reshape(B, W, N, C)


def _reference_jax(x, attention_centers, attention_spreads, token_proj_n_bias,
                   *, win_size, gamma):
    B, W, N, C = x.shape
    S = gamma
    V = C // S
    xf = x.astype(jnp.float32)
    idx = jnp.arange(N, dtype=jnp.float32)
    indx = idx[None, :] - idx[:, None]
    rel = jnp.stack([indx, indx * indx], axis=-1)
    pos_proj = -0.5 * jnp.concatenate(
        [-2.0 * attention_centers * attention_spreads, attention_spreads], axis=-1)
    pos_score = jnp.einsum("mnd,sd->smn", rel, pos_proj)            # (S, N, N)
    posmap = jax.nn.softmax(pos_score, axis=-1)                     # softmax over n
    x5 = xf.reshape(B, W, N, V, S)
    y = jnp.einsum("smn,bwnvs->bwmvs", posmap, x5)
    y = y + token_proj_n_bias.reshape(1, 1, N, 1, 1)
    return y.reshape(B, W, N, C)


if __name__ == "__main__":
    key = jax.random.PRNGKey(0)
    k_x, k_c, k_s, k_b, k_x2, k_c3, k_s3, k_x3 = jax.random.split(key, 8)

    win_size = 16
    att_std = 0.01

    # Nonzero bias so the bias-add path (broadcast over the m axis) is validated.
    token_proj_n_bias = 0.1 * jax.random.normal(k_b, (1, win_size, 1), dtype=jnp.float32)

    # --- case 1: gamma=4, small f32 input, C < 128 (full-C lane block) -----------
    gamma = 4
    attention_centers = att_std * jax.random.normal(k_c, (gamma, 1), dtype=jnp.float32)
    attention_spreads = 1.0 + att_std * jax.random.normal(k_s, (gamma, 1), dtype=jnp.float32)

    B, W, N, C = 2, 2, win_size, 32
    x = jax.random.normal(k_x, (B, W, N, C), dtype=jnp.float32)
    out = quamap1d_forward(x, attention_centers, attention_spreads, token_proj_n_bias,
                           win_size=win_size, gamma=gamma)
    out = jax.block_until_ready(out)
    ref = _reference_jax(x, attention_centers, attention_spreads, token_proj_n_bias,
                         win_size=win_size, gamma=gamma)
    assert out.shape == (B, W, N, C)
    assert jnp.allclose(out, ref, atol=1e-5, rtol=1e-5)

    # --- case 2: gamma=4, bf16 input, lane-tiled (C=4096 -> TC=512, 8 lane steps) -
    B2, W2, C2 = 2, 8, 4096
    x2 = jax.random.normal(k_x2, (B2, W2, win_size, C2),
                           dtype=jnp.float32).astype(jnp.bfloat16)
    out2 = quamap1d_forward(x2, attention_centers, attention_spreads, token_proj_n_bias,
                            win_size=win_size, gamma=gamma)
    out2 = jax.block_until_ready(out2)
    ref2 = _reference_jax(x2, attention_centers, attention_spreads, token_proj_n_bias,
                          win_size=win_size, gamma=gamma)
    assert out2.shape == (B2, W2, win_size, C2)
    assert jnp.allclose(out2.astype(jnp.float32), ref2, atol=3e-2, rtol=3e-2)

    # --- case 3: gamma=3 does NOT divide the 128-wide lane tile -> validates the
    # global-channel group mask across lane-tile boundaries (v2's latent bug).
    gamma3 = 3
    C3 = 1152
    attention_centers3 = att_std * jax.random.normal(k_c3, (gamma3, 1), dtype=jnp.float32)
    attention_spreads3 = 1.0 + att_std * jax.random.normal(k_s3, (gamma3, 1),
                                                           dtype=jnp.float32)
    x3 = jax.random.normal(k_x3, (2, 2, win_size, C3), dtype=jnp.float32)
    out3 = quamap1d_forward(x3, attention_centers3, attention_spreads3, token_proj_n_bias,
                            win_size=win_size, gamma=gamma3)
    out3 = jax.block_until_ready(out3)
    ref3 = _reference_jax(x3, attention_centers3, attention_spreads3, token_proj_n_bias,
                          win_size=win_size, gamma=gamma3)
    assert out3.shape == x3.shape
    assert jnp.allclose(out3, ref3, atol=5e-5, rtol=5e-5)

    print("KERNEL_OK")
</pallas_src>

<mosaic_0001>
module attributes {stable_mosaic.version = 11 : i64} {
  func.func @_quamap_kernel(%arg0: i32, %arg1: i32, %arg2: memref<16x64xf32, #tpu.memory_space<vmem>>, %arg3: memref<16x1xf32, #tpu.memory_space<vmem>>, %arg4: memref<2x16x32xf32, #tpu.memory_space<vmem>>, %arg5: memref<2x16x32xf32, #tpu.memory_space<vmem>>) attributes {dimension_semantics = [#tpu.dimension_semantics<parallel>, #tpu.dimension_semantics<parallel>], iteration_bounds = array<i64: 2, 1>, scalar_prefetch = 0 : i64, scratch_operands = 0 : i64, tpu.core_type = #tpu.core_type<tc>, window_params = [{pipeline_mode = #tpu.pipeline_mode<synchronous>, transform_indices = @transform_0, window_bounds = array<i64: 16, 64>}, {pipeline_mode = #tpu.pipeline_mode<synchronous>, transform_indices = @transform_1, window_bounds = array<i64: 16, 1>}, {transform_indices = @transform_2, window_bounds = array<i64: 2, 16, 32>}, {transform_indices = @transform_3, window_bounds = array<i64: 2, 16, 32>}]} {
    %c0 = arith.constant 0 : index
    %c0_0 = arith.constant 0 : index
    %0 = vector.load %arg2[%c0, %c0_0] : memref<16x64xf32, #tpu.memory_space<vmem>>, vector<16x64xf32>
    %c0_1 = arith.constant 0 : index
    %c0_2 = arith.constant 0 : index
    %1 = vector.load %arg3[%c0_1, %c0_2] : memref<16x1xf32, #tpu.memory_space<vmem>>, vector<16x1xf32>
    %2 = vector.shape_cast %1 : vector<16x1xf32> to vector<16x1xf32>
    %3 = vector.broadcast %2 : vector<16x1xf32> to vector<16x32xf32>
    %4 = tpu.iota {dimensions = array<i32: 1>} : vector<16x32xi32>
    %c32_i32 = arith.constant 32 : i32
    %5 = arith.muli %arg1, %c32_i32 : i32
    %6 = vector.broadcast %5 : i32 to vector<16x32xi32>
    %7 = arith.addi %4, %6 : vector<16x32xi32>
    %c4_i32 = arith.constant 4 : i32
    %c0_i32 = arith.constant 0 : i32
    %8 = arith.cmpi eq, %c4_i32, %c0_i32 : i32
    %c1_i32 = arith.constant 1 : i32
    %9 = arith.select %8, %c1_i32, %c4_i32 : i32
    %10 = vector.broadcast %9 : i32 to vector<16x32xi32>
    %11 = arith.remsi %7, %10 : vector<16x32xi32>
    %c0_i32_3 = arith.constant 0 : i32
    %12 = vector.broadcast %c0_i32_3 : i32 to vector<16x32xi32>
    %13 = arith.cmpi ne, %11, %12 : vector<16x32xi32>
    %c0_i32_4 = arith.constant 0 : i32
    %14 = vector.broadcast %c0_i32_4 : i32 to vector<16x32xi32>
    %15 = arith.cmpi slt, %11, %14 : vector<16x32xi32>
    %c0_i32_5 = arith.constant 0 : i32
    %16 = arith.cmpi slt, %9, %c0_i32_5 : i32
    %17 = vector.broadcast %16 : i1 to vector<16x32xi1>
    %18 = vector.broadcast %17 : vector<16x32xi1> to vector<16x32xi1>
    %19 = arith.xori %15, %18 : vector<16x32xi1>
    %20 = arith.andi %19, %13 : vector<16x32xi1>
    %21 = vector.broadcast %9 : i32 to vector<16x32xi32>
    %22 = arith.addi %11, %21 : vector<16x32xi32>
    %23 = arith.select %20, %22, %11 : vector<16x32xi1>, vector<16x32xi32>
    %c0_i32_6 = arith.constant 0 : i32
    %24 = vector.broadcast %c0_i32_6 : i32 to vector<16x32xi32>
    %25 = arith.cmpi eq, %23, %24 : vector<16x32xi32>
    %c4_i32_7 = arith.constant 4 : i32
    %c0_i32_8 = arith.constant 0 : i32
    %26 = arith.cmpi eq, %c4_i32_7, %c0_i32_8 : i32
    %c1_i32_9 = arith.constant 1 : i32
    %27 = arith.select %26, %c1_i32_9, %c4_i32_7 : i32
    %28 = vector.broadcast %27 : i32 to vector<16x32xi32>
    %29 = arith.remsi %7, %28 : vector<16x32xi32>
    %c0_i32_10 = arith.constant 0 : i32
    %30 = vector.broadcast %c0_i32_10 : i32 to vector<16x32xi32>
    %31 = arith.cmpi ne, %29, %30 : vector<16x32xi32>
    %c0_i32_11 = arith.constant 0 : i32
    %32 = vector.broadcast %c0_i32_11 : i32 to vector<16x32xi32>
    %33 = arith.cmpi slt, %29, %32 : vector<16x32xi32>
    %c0_i32_12 = arith.constant 0 : i32
    %34 = arith.cmpi slt, %27, %c0_i32_12 : i32
    %35 = vector.broadcast %34 : i1 to vector<16x32xi1>
    %36 = vector.broadcast %35 : vector<16x32xi1> to vector<16x32xi1>
    %37 = arith.xori %33, %36 : vector<16x32xi1>
    %38 = arith.andi %37, %31 : vector<16x32xi1>
    %39 = vector.broadcast %27 : i32 to vector<16x32xi32>
    %40 = arith.addi %29, %39 : vector<16x32xi32>
    %41 = arith.select %38, %40, %29 : vector<16x32xi1>, vector<16x32xi32>
    %c1_i32_13 = arith.constant 1 : i32
    %42 = vector.broadcast %c1_i32_13 : i32 to vector<16x32xi32>
    %43 = arith.cmpi eq, %41, %42 : vector<16x32xi32>
    %c4_i32_14 = arith.constant 4 : i32
    %c0_i32_15 = arith.constant 0 : i32
    %44 = arith.cmpi eq, %c4_i32_14, %c0_i32_15 : i32
    %c1_i32_16 = arith.constant 1 : i32
    %45 = arith.select %44, %c1_i32_16, %c4_i32_14 : i32
    %46 = vector.broadcast %45 : i32 to vector<16x32xi32>
    %47 = arith.remsi %7, %46 : vector<16x32xi32>
    %c0_i32_17 = arith.constant 0 : i32
    %48 = vector.broadcast %c0_i32_17 : i32 to vector<16x32xi32>
    %49 = arith.cmpi ne, %47, %48 : vector<16x32xi32>
    %c0_i32_18 = arith.constant 0 : i32
    %50 = vector.broadcast %c0_i32_18 : i32 to vector<16x32xi32>
    %51 = arith.cmpi slt, %47, %50 : vector<16x32xi32>
    %c0_i32_19 = arith.constant 0 : i32
    %52 = arith.cmpi slt, %45, %c0_i32_19 : i32
    %53 = vector.broadcast %52 : i1 to vector<16x32xi1>
    %54 = vector.broadcast %53 : vector<16x32xi1> to vector<16x32xi1>
    %55 = arith.xori %51, %54 : vector<16x32xi1>
    %56 = arith.andi %55, %49 : vector<16x32xi1>
    %57 = vector.broadcast %45 : i32 to vector<16x32xi32>
    %58 = arith.addi %47, %57 : vector<16x32xi32>
    %59 = arith.select %56, %58, %47 : vector<16x32xi1>, vector<16x32xi32>
    %c2_i32 = arith.constant 2 : i32
    %60 = vector.broadcast %c2_i32 : i32 to vector<16x32xi32>
    %61 = arith.cmpi eq, %59, %60 : vector<16x32xi32>
    %c4_i32_20 = arith.constant 4 : i32
    %c0_i32_21 = arith.constant 0 : i32
    %62 = arith.cmpi eq, %c4_i32_20, %c0_i32_21 : i32
    %c1_i32_22 = arith.constant 1 : i32
    %63 = arith.select %62, %c1_i32_22, %c4_i32_20 : i32
    %64 = vector.broadcast %63 : i32 to vector<16x32xi32>
    %65 = arith.remsi %7, %64 : vector<16x32xi32>
    %c0_i32_23 = arith.constant 0 : i32
    %66 = vector.broadcast %c0_i32_23 : i32 to vector<16x32xi32>
    %67 = arith.cmpi ne, %65, %66 : vector<16x32xi32>
    %c0_i32_24 = arith.constant 0 : i32
    %68 = vector.broadcast %c0_i32_24 : i32 to vector<16x32xi32>
    %69 = arith.cmpi slt, %65, %68 : vector<16x32xi32>
    %c0_i32_25 = arith.constant 0 : i32
    %70 = arith.cmpi slt, %63, %c0_i32_25 : i32
    %71 = vector.broadcast %70 : i1 to vector<16x32xi1>
    %72 = vector.broadcast %71 : vector<16x32xi1> to vector<16x32xi1>
    %73 = arith.xori %69, %72 : vector<16x32xi1>
    %74 = arith.andi %73, %67 : vector<16x32xi1>
    %75 = vector.broadcast %63 : i32 to vector<16x32xi32>
    %76 = arith.addi %65, %75 : vector<16x32xi32>
    %77 = arith.select %74, %76, %65 : vector<16x32xi1>, vector<16x32xi32>
    %c3_i32 = arith.constant 3 : i32
    %78 = vector.broadcast %c3_i32 : i32 to vector<16x32xi32>
    %79 = arith.cmpi eq, %77, %78 : vector<16x32xi32>
    %cst = arith.constant 0.000000e+00 : f32
    %c0_i32_26 = arith.constant 0 : i32
    %c2_i32_27 = arith.constant 2 : i32
    %80 = arith.muli %c0_i32_26, %c2_i32_27 : i32
    %c0_i32_28 = arith.constant 0 : i32
    %81 = arith.addi %c0_i32_28, %80 : i32
    %c0_i32_29 = arith.constant 0 : i32
    %82 = arith.addi %81, %c0_i32_29 : i32
    %83 = arith.index_cast %82 : i32 to index
    %c0_30 = arith.constant 0 : index
    %c0_31 = arith.constant 0 : index
    %84 = vector.load %arg4[%83, %c0_30, %c0_31] : memref<2x16x32xf32, #tpu.memory_space<vmem>>, vector<1x16x32xf32>
    %85 = vector.shape_cast %84 : vector<1x16x32xf32> to vector<16x32xf32>
    %86 = vector.broadcast %cst : f32 to vector<16x32xf32>
    %87 = arith.select %25, %85, %86 : vector<16x32xi1>, vector<16x32xf32>
    %88 = vector.broadcast %cst : f32 to vector<16x32xf32>
    %89 = arith.select %43, %85, %88 : vector<16x32xi1>, vector<16x32xf32>
    %90 = vector.broadcast %cst : f32 to vector<16x32xf32>
    %91 = arith.select %61, %85, %90 : vector<16x32xi1>, vector<16x32xf32>
    %92 = vector.broadcast %cst : f32 to vector<16x32xf32>
    %93 = arith.select %79, %85, %92 : vector<16x32xi1>, vector<16x32xf32>
    %94 = tpu.concatenate %87, %89, %91, %93 in 0 : vector<16x32xf32>, vector<16x32xf32>, vector<16x32xf32>, vector<16x32xf32> -> vector<64x32xf32>
    %cst_32 = arith.constant dense<0.000000e+00> : vector<16x32xf32>
    %95 = tpu.matmul %0, %94, %cst_32 {dimension_numbers = #tpu.dot_dimension_numbers<[1], [0], [0], [1], [0, 0, 1, 1], [], []>} : vector<16x64xf32>, vector<64x32xf32>, vector<16x32xf32> -> vector<16x32xf32>
    %96 = arith.addf %95, %3 : vector<16x32xf32>
    %97 = arith.index_cast %82 : i32 to index
    %c0_33 = arith.constant 0 : index
    %c0_34 = arith.constant 0 : index
    %98 = vector.load %arg5[%97, %c0_33, %c0_34] : memref<2x16x32xf32, #tpu.memory_space<vmem>>, vector<1x16x32xf32>
    %99 = vector.shape_cast %98 : vector<1x16x32xf32> to vector<16x32xf32>
    %100 = vector.shape_cast %96 : vector<16x32xf32> to vector<1x16x32xf32>
    tpu.vector_store %arg5[%97, %c0_33, %c0_34], %100 {strides = array<i32>} : memref<2x16x32xf32, #tpu.memory_space<vmem>>, vector<1x16x32xf32>,
    %c1_i32_35 = arith.constant 1 : i32
    %101 = arith.addi %81, %c1_i32_35 : i32
    %102 = arith.index_cast %101 : i32 to index
    %c0_36 = arith.constant 0 : index
    %c0_37 = arith.constant 0 : index
    %103 = vector.load %arg4[%102, %c0_36, %c0_37] : memref<2x16x32xf32, #tpu.memory_space<vmem>>, vector<1x16x32xf32>
    %104 = vector.shape_cast %103 : vector<1x16x32xf32> to vector<16x32xf32>
    %105 = vector.broadcast %cst : f32 to vector<16x32xf32>
    %106 = arith.select %25, %104, %105 : vector<16x32xi1>, vector<16x32xf32>
    %107 = vector.broadcast %cst : f32 to vector<16x32xf32>
    %108 = arith.select %43, %104, %107 : vector<16x32xi1>, vector<16x32xf32>
    %109 = vector.broadcast %cst : f32 to vector<16x32xf32>
    %110 = arith.select %61, %104, %109 : vector<16x32xi1>, vector<16x32xf32>
    %111 = vector.broadcast %cst : f32 to vector<16x32xf32>
    %112 = arith.select %79, %104, %111 : vector<16x32xi1>, vector<16x32xf32>
    %113 = tpu.concatenate %106, %108, %110, %112 in 0 : vector<16x32xf32>, vector<16x32xf32>, vector<16x32xf32>, vector<16x32xf32> -> vector<64x32xf32>
    %cst_38 = arith.constant dense<0.000000e+00> : vector<16x32xf32>
    %114 = tpu.matmul %0, %113, %cst_38 {dimension_numbers = #tpu.dot_dimension_numbers<[1], [0], [0], [1], [0, 0, 1, 1], [], []>} : vector<16x64xf32>, vector<64x32xf32>, vector<16x32xf32> -> vector<16x32xf32>
    %115 = arith.addf %114, %3 : vector<16x32xf32>
    %116 = arith.index_cast %101 : i32 to index
    %c0_39 = arith.constant 0 : index
    %c0_40 = arith.constant 0 : index
    %117 = vector.load %arg5[%116, %c0_39, %c0_40] : memref<2x16x32xf32, #tpu.memory_space<vmem>>, vector<1x16x32xf32>
    %118 = vector.shape_cast %117 : vector<1x16x32xf32> to vector<16x32xf32>
    %119 = vector.shape_cast %115 : vector<16x32xf32> to vector<1x16x32xf32>
    tpu.vector_store %arg5[%116, %c0_39, %c0_40], %119 {strides = array<i32>} : memref<2x16x32xf32, #tpu.memory_space<vmem>>, vector<1x16x32xf32>,
    %c1_i32_41 = arith.constant 1 : i32
    return
  }
  func.func @transform_0(%arg0: i32, %arg1: i32) -> (i32, i32) {
    %c0_i32 = arith.constant 0 : i32
    %c0_i32_0 = arith.constant 0 : i32
    %c0_i32_1 = arith.constant 0 : i32
    return %c0_i32, %c0_i32_0 : i32, i32
  }
  func.func @transform_1(%arg0: i32, %arg1: i32) -> (i32, i32) {
    %c0_i32 = arith.constant 0 : i32
    %c0_i32_0 = arith.constant 0 : i32
    %c0_i32_1 = arith.constant 0 : i32
    return %c0_i32, %c0_i32_0 : i32, i32
  }
  func.func @transform_2(%arg0: i32, %arg1: i32) -> (i32, i32, i32) {
    %c0_i32 = arith.constant 0 : i32
    %c0_i32_0 = arith.constant 0 : i32
    return %arg0, %c0_i32, %arg1 : i32, i32, i32
  }
  func.func @transform_3(%arg0: i32, %arg1: i32) -> (i32, i32, i32) {
    %c0_i32 = arith.constant 0 : i32
    %c0_i32_0 = arith.constant 0 : i32
    return %arg0, %c0_i32, %arg1 : i32, i32, i32
  }
}

</mosaic_0001>

<bundles_post_ra>
// kernel: quamap1d_forward.1
= control target key start
LH: loop header
LB: loop body
LE: loop exit
PB: predicated region body
PF: predicated region fallthrough
CT: control target
= control target key end

     0   :  { %8 = vsyncpa [#allocation3], 0  ;;  %s954_s0 = inlined_call_operand.vmem [shape: f32[16,64], index: 0, kind: input, shape index: {}]   ;;  %s955_s1 = inlined_call_operand.vmem [shape: f32[16,1], index: 1, kind: input, shape index: {}]   ;;  %s956_s2 = inlined_call_operand.vmem [shape: f32[4,16,32], index: 2, kind: input, shape index: {}]   ;;  %s957_s3 = inlined_call_operand.hbm [shape: f32[4,16,32], index: 3, kind: output, shape index: {}]  }
   0x1   :  { %10 = vsyncpa [#allocation3 + $0x1], 0  ;;  %s824_s12 = smov 0   ;;  %s826_s13 = smov 0  }
   0x2   :  { %s828_s14 = smov 0   ;;  %s830_s15 = smov 0  }
   0x3   :  { %s832_s16 = smov 0   ;;  %s834_s17 = smov 0  }
   0x4 LB: > { %s513_s18 = sadd.s32 4294967295, %s798_s17   ;;  %s514_s19 = sadd.s32 4294967294, %s798_s17   ;;  %s798_s17 = sphi %s834_s17, %s16_s17   ;;  %s794_s16 = sphi %s832_s16, %s964_s16   ;;  %s790_s15 = sphi %s830_s15, %s963_s15   ;;  %s786_s14 = sphi %s828_s14, %s962_s14   ;;  %s782_s13 = sphi %s826_s13, %s961_s13   ;;  %s778_s12 = sphi %s824_s12, %s960_s12  }
   0x5   : > { %s28_s20 = sadd.s32 1, %s794_s16  ;;  %s107_s21 = sadd.s32 1, %s786_s14 }
   0x6   : > { %p30_p0 = scmp.ge.s32.totalorder %s28_s20, 2  ;;  %p117_p1 = scmp.ne.s32.totalorder %s786_s14, %s782_s13 }
   0x7   : > { %p118_p2 = scmp.eq.s32.totalorder %s513_s18, 1  ;;  %p123_p3 = scmp.ne.s32.totalorder %s782_s13, %s778_s12 }
   0x8   : > { %s966_s20 = smov (%p30_p0, %s28_s20), 0  ;;  %p124_p5 = scmp.eq.s32.totalorder %s514_s19, 1 }
   0x9   : > { %p864_p4 = por %p118_p2, %p117_p1  ;;  %s102_s23 = ssub.s32 %s794_s16, %s966_s20 }
   0xa   : > { %p517_p6 = scmp.ge.s32.totalorder %s798_s17, 1  ;;  %p105_p7 = scmp.eq.s32.totalorder %s102_s23, 0 }
   0xb   : > { %p871_p8 = por %p124_p5, %p123_p3  ;;  %p161_p9 = scmp.lt.s32.totalorder %s798_s17, 3 }
   0xc   : > { %s877_s25 = scalar_select %p105_p7, %s786_s14, %s107_s21  }
   0xd   : > { %p162_p10 = pnand %p517_p6, %p161_p9 }
   0xe   : > { %s519_s26 = sshll.u32 (!%p162_p10), %s790_s15, 1  ;;  %v214_v0 = vlaneseq (!%p162_p10)  ;;  %v200_v1 = vld [vmem:[%s954_s0] sm:$0xff] (!%p162_p10)  ;;  %vm245_vm0 = vcmask (!%p162_p10), 523264   ;;  %v800_v4 = vmov (!%p162_p10), 0   ;;  %v203_v6 = vld [vmem:[%s955_s1 + $0x8] sm:$0xff] (!%p162_p10)  ;;  %s186_s18 = sand.u32 (!%p162_p10), 1, %s782_s13  }
   0xf   : > { %165 = sbr.rel (%p162_p10) target bundleno = 275 (0x113), region = 32  ;;  %v202_v2 = vld [vmem:[%s955_s1] sm:$0xff] (!%p162_p10)  ;;  %p190_p11 = scmp.lt.s32.totalorder (!%p162_p10), %s519_s26, 3  ;;  %591 = vmatprep.mubr.msk.f32.mxu0 (!%p162_p10), %vm245_vm0, %v200_v1  ;;  %610 = vmatprep.mubr.msk.f32.mxu1 (!%p162_p10), %vm245_vm0, %v200_v1  ;;  %v201_v13 = vld [vmem:[%s954_s0 + $0x8] sm:$0xff] (!%p162_p10)  ;;  %vm327_vm9 = vcmask (!%p162_p10), 261120  }
  0x10   : > { %v215_v3 = vand.u32 (!%p162_p10), 127, %v214_v0  ;;  %719 = vset.pattern.permute.xlu0 (!%p162_p10), %v800_v4  ;;  %s518_s19 = sshll.u32 (!%p162_p10), %s186_s18, 5  ;;  %s801_s4 = smov (!%p162_p10), [#allocation2]  }
  0x11   : > { %206 = vperm.xlu0 (!%p162_p10), %719, %v202_v2   ;;  %s188_s21 = scalar_lea.vmem (!%p162_p10), [#allocation2], %s518_s19  ;;  %s724_s5 = sshll.u32 (!%p162_p10), %s801_s4, 4  ;;  %s725_s5 = int_to_ptr.vmem [resolvable:$false] %s724_s5 }
  0x12   : > { %v223_v5 = vand.u32 (!%p162_p10), 3, %v215_v3  ;;  %s435_s23 = sshll.u32 (!%p162_p10), %s188_s21, 4  ;;  %s901_s23 = int_to_ptr.vmem [resolvable:$true] %s435_s23 }
  0x13   : > { %s720_s30 = scalar_lea.vmem (!%p162_p10), %s901_s23, 512  ;;  %p727_p1 = scmp.lt.s32.totalorder (!%p162_p10), %s901_s23, %s725_s5 }
  0x14   : > { %vm231_vm1 = vcmp.eq.s32.totalorder (!%p162_p10), %v223_v5, 0  ;;  %vm232_vm2 = vcmp.eq.s32.totalorder (!%p162_p10), %v223_v5, 1  ;;  %vm233_vm5 = vcmp.eq.s32.totalorder (!%p162_p10), %v223_v5, 2  ;;  %vm234_vm7 = vcmp.eq.s32.totalorder (!%p162_p10), %v223_v5, 3  ;;  %p721_p12 = scmp.ne.s32.totalorder (!%p162_p10), %s901_s23, %s720_s30 }
  0x15   : > { %vm614_vm3 = vmpackc.low (!%p162_p10), %vm231_vm1, %vm231_vm1  ;;  %211 = vperm.xlu0 (!%p162_p10), %719, %v203_v6  }
  0x16   : > { %s968_s26 = smov (!%p190_p11, %s519_s26), 3  ;;  %vm620_vm4 = vmpackc.low %vm232_vm2, %vm232_vm2  ;;  %p722_p13 = pnand %p721_p12, %p864_p4 }
  0x17   : > { %s552_s6 = sshll.u32 %s968_s26, 4  ;;  %vm626_vm6 = vmpackc.low %vm233_vm5, %vm233_vm5  ;;  %s554_s26 = sshll.u32 %s790_s15, 9 }
  0x18   : > { %s197_s9 = scalar_lea.vmem %s956_s2, %s552_s6  ;;  %vm632_vm8 = vmpackc.low %vm234_vm7, %vm234_vm7  ;;  %s906_s29 = scalar_lea.hbm %s957_s3, %s554_s26 }
  0x19   : > { %v235_v7 = vld [vmem:[%s197_s9] sm:$0xff]  ;;  %v236_v8 = vld [vmem:[%s197_s9 + $0x8] sm:$0xff]  ;;  %v532_v10 = vld [vmem:[%s197_s9 + $0x10] sm:$0xff]  ;;  %s908_s15 = scalar_lea.sflag [#allocation3], %s186_s18  ;;  %p723_p0 = pneg %p722_p13 }
  0x1a   : > { %v613_v9 = vpack.c.bf16 %v236_v8, %v235_v7  ;;  %v533_v11 = vld [vmem:[%s197_s9 + $0x18] sm:$0xff]  ;;  %s726_s6 = scalar_lea.vmem %s725_s5, 1024 }
  0x1b   : > { %v637_v12 = vpack.c.bf16 %v533_v11, %v532_v10  ;;  %p728_p2 = scmp.lt.s32.totalorder %s726_s6, %s720_s30 }
  0x1c   : > { %615 = vmatprep.subr.msk.bf16.mxu0 %vm614_vm3, %v613_v9 }
  0x1d   : > { %639 = vmatprep.subr.msk.bf16.mxu1 %vm614_vm3, %v637_v12  ;;  %618 = vmatpush3.bf16.msk.msra.mxu0 %vm614_vm3, %v613_v9  ;;  %p729_p3 = por %p728_p2, %p727_p1 }
  0x1e   : > { %642 = vmatpush3.bf16.msk.msra.mxu1 %vm614_vm3, %v637_v12  ;;  %621 = vmatprep.subr.msk.bf16.mxu0 %vm620_vm4, %v613_v9 }
  0x1f   : > { %645 = vmatprep.subr.msk.bf16.mxu1 %vm620_vm4, %v637_v12  ;;  %p730_p5 = pnand %p729_p3, %p723_p0 }
  0x21   : > { %624 = vmatpush3.bf16.msk.msra.mxu0 %vm620_vm4, %v613_v9 }
  0x22   : > { %648 = vmatpush3.bf16.msk.msra.mxu1 %vm620_vm4, %v637_v12  ;;  %627 = vmatprep.subr.msk.bf16.mxu0 %vm626_vm6, %v613_v9 }
  0x23   : > { %651 = vmatprep.subr.msk.bf16.mxu1 %vm626_vm6, %v637_v12 }
  0x25   : > { %630 = vmatpush3.bf16.msk.msra.mxu0 %vm626_vm6, %v613_v9 }
  0x26   : > { %654 = vmatpush3.bf16.msk.msra.mxu1 %vm626_vm6, %v637_v12  ;;  %633 = vmatprep.subr.msk.bf16.mxu0 %vm632_vm8, %v613_v9 }
  0x27   : > { %657 = vmatprep.subr.msk.bf16.mxu1 %vm632_vm8, %v637_v12 }
  0x29   : > { %636 = vmatpush3.bf16.msk.msra.mxu0 %vm632_vm8, %v613_v9 }
  0x2a   : > { %660 = vmatpush3.bf16.msk.msra.mxu1 %vm632_vm8, %v637_v12 }
  0x2c   : > { %592 = vmatmul.mubr.msk.f32.vlgmr.msra.gmra.mrb[0].mxu0 %vm245_vm0, %v201_v13 }
  0x2d   : > { %611 = vmatmul.mubr.msk.f32.vlgmr.msra.gmra.mrb[0].mxu1 %vm245_vm0, %v201_v13 }
  0x90   : > { %v207_v14 = vpop.permute.xlu0 %206 }
  0x94   : > { %v212_v15 = vpop.permute.xlu0 %211 }
  0xff   : > { %v593_v16 = vpop.f32.mrb[0].mxu0 }
 0x100   : > { %v324_v17 = vadd.f32 %v593_v16, %v212_v15  ;;  %v612_v18 = vpop.f32.mrb[0].mxu1  ;;  %v318_v19 = vpop.f32.mrb[1].mxu0 }
 0x101   : > { %v413_v20 = vadd.f32 %v612_v18, %v212_v15  ;;  %v319_v21 = vadd.f32 %v318_v19, %v207_v14  ;;  %v407_v22 = vpop.f32.mrb[1].mxu1 }
 0x102   : > { %329 = vst.msk [vmem:[%s188_s21 + $0x8] sm:$0xff] %vm327_vm9, %v324_v17  ;;  %v408_v23 = vadd.f32 %v407_v22, %v207_v14 }
 0x103   : > { %545 = vst.msk [vmem:[%s188_s21 + $0x18] sm:$0xff] %vm327_vm9, %v413_v20  ;;  %328 = vst.msk [vmem:[%s188_s21] sm:$0xff] %vm327_vm9, %v319_v21 }
 0x104   : > { %544 = vst.msk [vmem:[%s188_s21 + $0x10] sm:$0xff] %vm327_vm9, %v408_v23 }
 0x105   : > { %733 = shalt.err (!%p730_p5)
}
 0x106   : > { %s734_s7 = scalar_lea.hbm %s906_s29, 512  ;;  %s738_s10 = scalar_lea.hbm %s957_s3, 1024 }
 0x107   : > { %p735_p6 = scmp.ne.s32.totalorder %s906_s29, %s734_s7  ;;  %p739_p10 = scmp.lt.u32.totalorder %s906_s29, %s957_s3 }
 0x108   : > { %p740_p11 = scmp.lt.u32.totalorder %s738_s10, %s734_s7  ;;  %p742_p13 = scmp.lt.u32.totalorder %s734_s7, %s906_s29 }
 0x109   : > { %p736_p7 = pnand %p735_p6, %p864_p4 }
 0x10a   : > { %p741_p12 = por %p740_p11, %p739_p10 }
 0x10b   : > { %p737_p9 = pneg %p736_p7 }
 0x10c   : > { %p743_p0 = por %p742_p13, %p741_p12 }
 0x10e   : > { %p744_p1 = pnand %p743_p0, %p737_p9 }
 0x110   : > { %747 = shalt.err (!%p744_p1)
}
 0x111   : > { %s802_s19 = smov 128   ;;  %s803_s21 = smov 8  }
 0x112   : > { %661 = dma.vmem_to_hbm [thread:$0]  (%p864_p4), %s901_s23, 512, %s906_s29, %s908_s15, %s802_s19, %s802_s19, %s803_s21  }
 0x113 PF: > { %p667_p2 = scmp.ge.s32.totalorder %s798_s17, 2  ;;  %s450_s26 = sand.u32 1, %s778_s12  }
 0x114   : > { %s451_s27 = scalar_lea.sflag [#allocation3], %s450_s26 }
 0x115   : > { %p664_p3 = pnand %p667_p2, %p871_p8 }
 0x117   : > { %773 = dma.done.wait (!%p664_p3), %s451_s27, 512  }
 0x118   : > { %775 = vsyncadd (!%p664_p3), %s451_s27, 4294966784  ;;  %s16_s17 = sadd.s32 1, %s798_s17   ;;  %s960_s12 = smov %s782_s13 }
 0x119   : > { %p13_p5 = scmp.ge.s32.totalorder %s16_s17, 4   ;;  %s961_s13 = smov %s786_s14 }
 0x11a   : > { %s962_s14 = smov %s877_s25  ;;  %s963_s15 = smov %s794_s16 }
 0x11b   : > { %s964_s16 = smov %s966_s20  ;;  %15 = sbr.rel (!%p13_p5) target bundleno = 4 (0x4), region = 69 }
 0x122   :  { %456 = vsyncpa [#allocation3], 1 }
 0x123   :  { %458 = vsyncpa [#allocation3 + $0x1], 1 }

</bundles_post_ra>
